<compile_context>
chip_gen: v7x
topology: tpu7x:2x2x1
jax: 0.10.0
libtpu: 0.0.40
codegen_flags: <defaults>
</compile_context>

<pallas_src>
import math

import jax
import jax.numpy as jnp
from jax import lax
from jax.experimental import pallas as pl
from jax.experimental.pallas import tpu as pltpu

_MIB = 1024 * 1024
_DNUMS = (((2,), (2,)), ((0,), (0,)))   # contract I (last dims), batch over K


# ----------------------------------------------------------------------------
# Kernels
# ----------------------------------------------------------------------------
def _make_kernel(has_bias: bool, multi_i: bool):
    """Kernel variants: with/without bias, single vs multi reduction step."""
    if multi_i:
        if has_bias:
            def kernel(x_ref, w_ref, b_ref, o_ref, acc_ref):
                i = pl.program_id(3)

                @pl.when(i == 0)
                def _():
                    acc_ref[...] = jnp.zeros_like(acc_ref)

                acc_ref[...] += lax.dot_general(
                    x_ref[...], w_ref[...], dimension_numbers=_DNUMS,
                    preferred_element_type=jnp.float32)

                @pl.when(i == pl.num_programs(3) - 1)
                def _():
                    o_ref[...] = (acc_ref[...]
                                  + b_ref[...].astype(jnp.float32)
                                  ).astype(o_ref.dtype)
        else:
            def kernel(x_ref, w_ref, o_ref, acc_ref):
                i = pl.program_id(3)

                @pl.when(i == 0)
                def _():
                    acc_ref[...] = jnp.zeros_like(acc_ref)

                acc_ref[...] += lax.dot_general(
                    x_ref[...], w_ref[...], dimension_numbers=_DNUMS,
                    preferred_element_type=jnp.float32)

                @pl.when(i == pl.num_programs(3) - 1)
                def _():
                    o_ref[...] = acc_ref[...].astype(o_ref.dtype)
    else:
        if has_bias:
            def kernel(x_ref, w_ref, b_ref, o_ref):
                acc = lax.dot_general(
                    x_ref[...], w_ref[...], dimension_numbers=_DNUMS,
                    preferred_element_type=jnp.float32)
                o_ref[...] = (acc + b_ref[...].astype(jnp.float32)
                              ).astype(o_ref.dtype)
        else:
            def kernel(x_ref, w_ref, o_ref):
                o_ref[...] = lax.dot_general(
                    x_ref[...], w_ref[...], dimension_numbers=_DNUMS,
                    preferred_element_type=jnp.float32).astype(o_ref.dtype)
    return kernel


# ----------------------------------------------------------------------------
# Device / tiling helpers
# ----------------------------------------------------------------------------
def _device_info():
    """(vmem_capacity_bytes, preferred lane alignment) with safe fallbacks."""
    vmem_cap = 64 * _MIB                       # conservative (v7x-sized)
    try:
        vmem_cap = int(pltpu.get_tpu_info().vmem_capacity_bytes)
    except Exception:
        pass
    kind = ""
    try:
        kind = jax.devices()[0].device_kind.lower()
    except Exception:
        pass
    lane_pref = 128 if ("v3" in kind or "v4" in kind or "v5" in kind) else 256
    if "7" in kind:                            # v7x: 64 MiB VMEM per TC
        vmem_cap = min(vmem_cap, 64 * _MIB)
    return vmem_cap, lane_pref


def _default_caps(vmem_cap):
    if vmem_cap >= 96 * _MIB:                  # v5e / v6e: 128 MiB per TC
        caps = {"kt": 8, "tm": 512, "tn": 512, "tk": 1024}
        budget = min(int(vmem_cap * 0.80), vmem_cap - 16 * _MIB)
    else:                                      # v7x: 64 MiB per TC
        caps = {"kt": 4, "tm": 256, "tn": 256, "tk": 512}
        budget = min(int(vmem_cap * 0.75), vmem_cap - 12 * _MIB)
    return caps, budget


def _tile_and_pad(dim, cap, aligns):
    """(tile, padded_dim): full dim if it fits, else the largest aligned
    divisor under cap, else an aligned tile with the dim padded up."""
    if dim <= cap:
        return dim, dim                        # full-dim block is always legal
    for a in aligns:                           # exact divisor, no padding
        t = (cap // a) * a
        while t >= a:
            if dim % t == 0:
                return t, dim
            t -= a
    a = aligns[-1]                             # pad to an aligned tile
    t = max(a, (cap // a) * a)
    padded = -(-dim // t) * t
    return t, padded


# ----------------------------------------------------------------------------
# K-major entry point: x (K, B, I), weight (K, O, I), bias (K, O) -> (K, B, O)
# ----------------------------------------------------------------------------
def ensembled_linear_kmajor(x_kbi, weight, bias=None, *,
                            compute_in_bf16=False, tile_caps=None):
    K, B, I = x_kbi.shape
    Kw, O, Iw = weight.shape
    assert K == Kw and I == Iw, "weight shape mismatch"
    has_bias = bias is not None
    if has_bias:
        assert bias.shape == (K, O), "bias shape mismatch"

    out_dtype = x_kbi.dtype
    if compute_in_bf16:
        x_kbi = x_kbi.astype(jnp.bfloat16)
        weight = weight.astype(jnp.bfloat16)

    isz_x = jnp.dtype(x_kbi.dtype).itemsize
    isz_w = jnp.dtype(weight.dtype).itemsize
    isz_b = jnp.dtype(bias.dtype).itemsize if has_bias else 0
    isz_o = jnp.dtype(out_dtype).itemsize
    sub = max(8, 32 // isz_x)                  # dtype-aware sublane alignment

    vmem_cap, lane_pref = _device_info()
    caps, budget = _default_caps(vmem_cap)
    if tile_caps:
        caps.update(tile_caps)

    def select(c):
        kt, K_p = _tile_and_pad(K, c["kt"], (1,))
        tm, B_p = _tile_and_pad(B, c["tm"], (sub,))
        tn, O_p = _tile_and_pad(O, c["tn"], (lane_pref, 128))
        tk, I_p = _tile_and_pad(I, c["tk"], (lane_pref, 128))
        return ({"kt": kt, "tm": tm, "tn": tn, "tk": tk},
                {"K": K_p, "B": B_p, "O": O_p, "I": I_p})

    def working_set(t, gi):
        x_b = t["kt"] * t["tm"] * t["tk"] * isz_x
        w_b = t["kt"] * t["tn"] * t["tk"] * isz_w
        b_b = t["kt"] * t["tn"] * isz_b
        o_b = t["kt"] * t["tm"] * t["tn"] * isz_o
        acc = t["kt"] * t["tm"] * t["tn"] * 4 if gi > 1 else 0
        return 2 * (x_b + w_b + b_b + o_b) + acc      # double-buffered tiles

    # Shrink tiles until the working set fits the per-generation VMEM budget.
    # Shrink order (tm, kt, tn, tk) preserves the gi==1 single-pass reduction
    # (and weight-streamed-once property) as long as possible.
    tiles, pads = select(caps)
    for _ in range(32):
        gi = pads["I"] // tiles["tk"]
        if working_set(tiles, gi) <= budget:
            break
        shrunk = False
        for name, floor in (("tm", sub), ("kt", 1), ("tn", 128), ("tk", 128)):
            if tiles[name] > floor:
                caps[name] = max(floor, tiles[name] // 2)
                shrunk = True
                break
        if not shrunk:
            break
        tiles, pads = select(caps)

    gk = pads["K"] // tiles["kt"]
    gm = pads["B"] // tiles["tm"]
    gn = pads["O"] // tiles["tn"]
    gi = pads["I"] // tiles["tk"]

    # Guarantee >= 2 parallel blocks so both v7x TensorCores can be used.
    if gk * gm * gn == 1:
        if tiles["kt"] % 2 == 0:
            tiles["kt"] //= 2
        elif tiles["tm"] % (2 * sub) == 0:
            tiles["tm"] //= 2
        elif tiles["tn"] % 256 == 0:
            tiles["tn"] //= 2
        gk = pads["K"] // tiles["kt"]
        gm = pads["B"] // tiles["tm"]
        gn = pads["O"] // tiles["tn"]

    kt, tm, tn, tk = tiles["kt"], tiles["tm"], tiles["tn"], tiles["tk"]
    K_p, B_p, O_p, I_p = pads["K"], pads["B"], pads["O"], pads["I"]
    multi_i = gi > 1

    # Zero-pad awkward dims (sliced off the output below).
    if (K_p, B_p, I_p) != (K, B, I):
        x_kbi = jnp.pad(x_kbi, ((0, K_p - K), (0, B_p - B), (0, I_p - I)))
    if (K_p, O_p, I_p) != (K, O, I):
        weight = jnp.pad(weight, ((0, K_p - K), (0, O_p - O), (0, I_p - I)))
    if has_bias:
        bias3 = bias.reshape(K, 1, O)          # (K, 1, O): legal small block
        if (K_p, O_p) != (K, O):
            bias3 = jnp.pad(bias3, ((0, K_p - K), (0, 0), (0, O_p - O)))

    x_bytes = K_p * B_p * I_p * isz_x
    w_bytes = K_p * O_p * I_p * isz_w
    weight_outer = w_bytes >= x_bytes

    if multi_i:
        grid = (gk, gm, gn, gi)
        x_map = lambda k, m, n, i: (k, m, i)
        w_map = lambda k, m, n, i: (k, n, i)
        b_map = lambda k, m, n, i: (k, 0, n)
        o_map = lambda k, m, n, i: (k, m, n)
        dim_sem = ("parallel", "parallel", "parallel", "arbitrary")
        scratch = [pltpu.VMEM((kt, tm, tn), jnp.float32)]
        x_reads, w_reads = gn, gm
    elif weight_outer:
        # Weight is the bigger operand: key it to the outer (n) axis so it is
        # streamed from HBM exactly once; x is re-read gn times.
        grid = (gk, gn, gm)
        x_map = lambda k, n, m: (k, m, 0)
        w_map = lambda k, n, m: (k, n, 0)
        b_map = lambda k, n, m: (k, 0, n)
        o_map = lambda k, n, m: (k, m, n)
        dim_sem = ("parallel", "parallel", "parallel")
        scratch = []
        x_reads, w_reads = gn, 1
    else:
        grid = (gk, gm, gn)
        x_map = lambda k, m, n: (k, m, 0)
        w_map = lambda k, m, n: (k, n, 0)
        b_map = lambda k, m, n: (k, 0, n)
        o_map = lambda k, m, n: (k, m, n)
        dim_sem = ("parallel", "parallel", "parallel")
        scratch = []
        x_reads, w_reads = 1, gm

    in_specs = [pl.BlockSpec((kt, tm, tk), x_map),
                pl.BlockSpec((kt, tn, tk), w_map)]
    operands = [x_kbi, weight]
    if has_bias:
        in_specs.append(pl.BlockSpec((kt, 1, tn), b_map))
        operands.append(bias3)

    ws = working_set(tiles, gi)
    vmem_limit = int(min(max(ws + 8 * _MIB, 32 * _MIB), vmem_cap - 8 * _MIB))

    cost = pl.CostEstimate(
        flops=2 * K_p * B_p * I_p * O_p,
        transcendentals=0,
        bytes_accessed=int(x_reads * x_bytes + w_reads * w_bytes
                           + (K_p * O_p * isz_b if has_bias else 0)
                           + K_p * B_p * O_p * isz_o))

    out = pl.pallas_call(
        _make_kernel(has_bias, multi_i),
        out_shape=jax.ShapeDtypeStruct((K_p, B_p, O_p), out_dtype),
        grid_spec=pltpu.PrefetchScalarGridSpec(
            num_scalar_prefetch=0,
            grid=grid,
            in_specs=in_specs,
            out_specs=pl.BlockSpec((kt, tm, tn), o_map),
            scratch_shapes=scratch),
        compiler_params=pltpu.CompilerParams(
            dimension_semantics=dim_sem,
            vmem_limit_bytes=vmem_limit),
        cost_estimate=cost,
    )(*operands)

    if (K_p, B_p, O_p) != (K, B, O):
        out = out[:K, :B, :O]
    return out


# ----------------------------------------------------------------------------
# PyTorch-layout wrapper (module contract): x (B, K, I) -> (B, K, O)
# ----------------------------------------------------------------------------
def ensembled_linear(x, weight, bias=None, **kwargs):
    """x (B, K, I), weight (K, O, I), bias (K, O) -> (B, K, O).

    The two boundary transposes are glue only; for a stack of EnsembledLinear
    layers keep the K-major layout and call `ensembled_linear_kmajor`."""
    x_kbi = jnp.transpose(x, (1, 0, 2))
    out_kbo = ensembled_linear_kmajor(x_kbi, weight, bias, **kwargs)
    return jnp.transpose(out_kbo, (1, 0, 2))


def init_params(key, num_modules, in_features, out_features, dtype=jnp.float32):
    """Mimic EnsembledLinear.reset_parameters (kaiming_uniform a=sqrt(5))."""
    kw, kb = jax.random.split(key)
    bound = 1.0 / math.sqrt(in_features)
    weight = jax.random.uniform(
        kw, (num_modules, out_features, in_features),
        minval=-bound, maxval=bound, dtype=dtype)
    bias = jax.random.uniform(
        kb, (num_modules, out_features),
        minval=-bound, maxval=bound, dtype=dtype)
    return weight, bias


if __name__ == "__main__":
    key = jax.random.PRNGKey(0)
    k_x, k_p, k_x2 = jax.random.split(key, 3)

    # Case 1: bias, single-I-block fast path.
    B, K, I, O = 8, 4, 32, 16       # batch, num_modules, in_features, out_features
    x = jax.random.normal(k_x, (B, K, I), dtype=jnp.float32)
    weight, bias = init_params(k_p, K, I, O)
    out = jax.block_until_ready(jax.jit(ensembled_linear)(x, weight, bias))
    ref = jnp.einsum('bki,koi->bko', x, weight) + bias[None, :, :]
    assert out.shape == (B, K, O)
    assert jnp.allclose(out, ref, atol=1e-5, rtol=1e-5)

    # Case 2: no-bias variant (no zeros bias materialized in HBM).
    out_nb = jax.block_until_ready(
        jax.jit(lambda a, w: ensembled_linear(a, w))(x, weight))
    ref_nb = jnp.einsum('bki,koi->bko', x, weight)
    assert jnp.allclose(out_nb, ref_nb, atol=1e-5, rtol=1e-5)

    # Case 3: force the multi-step reduction (f32 accumulator) path with a
    # small tk override so the I axis spans two blocks.
    B2, K2, I2, O2 = 16, 2, 256, 128
    x2 = jax.random.normal(k_x2, (B2, K2, I2), dtype=jnp.float32)
    w2, b2 = init_params(jax.random.PRNGKey(1), K2, I2, O2)
    f = jax.jit(lambda a, w, b: ensembled_linear(a, w, b, tile_caps={"tk": 128}))
    out2 = jax.block_until_ready(f(x2, w2, b2))
    ref2 = jnp.einsum('bki,koi->bko', x2, w2) + b2[None, :, :]
    assert jnp.allclose(out2, ref2, atol=1e-4, rtol=1e-5)

    print("KERNEL_OK")
</pallas_src>

<mosaic_0001>
module attributes {stable_mosaic.version = 11 : i64} {
  func.func @kernel(%arg0: i32, %arg1: i32, %arg2: i32, %arg3: memref<2x8x32xf32, #tpu.memory_space<vmem>>, %arg4: memref<2x16x32xf32, #tpu.memory_space<vmem>>, %arg5: memref<2x1x16xf32, #tpu.memory_space<vmem>>, %arg6: memref<2x8x16xf32, #tpu.memory_space<vmem>>) attributes {dimension_semantics = [#tpu.dimension_semantics<parallel>, #tpu.dimension_semantics<parallel>, #tpu.dimension_semantics<parallel>], iteration_bounds = array<i64: 2, 1, 1>, scalar_prefetch = 0 : i64, scratch_operands = 0 : i64, tpu.core_type = #tpu.core_type<tc>, window_params = [{transform_indices = @transform_0, window_bounds = array<i64: 2, 8, 32>}, {transform_indices = @transform_1, window_bounds = array<i64: 2, 16, 32>}, {transform_indices = @transform_2, window_bounds = array<i64: 2, 1, 16>}, {transform_indices = @transform_3, window_bounds = array<i64: 2, 8, 16>}]} {
    %c0 = arith.constant 0 : index
    %c0_0 = arith.constant 0 : index
    %c0_1 = arith.constant 0 : index
    %0 = vector.load %arg3[%c0, %c0_0, %c0_1] : memref<2x8x32xf32, #tpu.memory_space<vmem>>, vector<2x8x32xf32>
    %c0_2 = arith.constant 0 : index
    %c0_3 = arith.constant 0 : index
    %c0_4 = arith.constant 0 : index
    %1 = vector.load %arg4[%c0_2, %c0_3, %c0_4] : memref<2x16x32xf32, #tpu.memory_space<vmem>>, vector<2x16x32xf32>
    %cst = arith.constant dense<0.000000e+00> : vector<2x8x16xf32>
    %2 = tpu.matmul %0, %1, %cst {dimension_numbers = #tpu.dot_dimension_numbers<[2], [2], [1], [1], [0, 0, 0, 1, 1, 1], [0], [0]>} : vector<2x8x32xf32>, vector<2x16x32xf32>, vector<2x8x16xf32> -> vector<2x8x16xf32>
    %c0_5 = arith.constant 0 : index
    %c0_6 = arith.constant 0 : index
    %c0_7 = arith.constant 0 : index
    %3 = vector.load %arg5[%c0_5, %c0_6, %c0_7] : memref<2x1x16xf32, #tpu.memory_space<vmem>>, vector<2x1x16xf32>
    %4 = vector.broadcast %3 : vector<2x1x16xf32> to vector<2x8x16xf32>
    %5 = arith.addf %2, %4 : vector<2x8x16xf32>
    %c0_8 = arith.constant 0 : index
    %c0_9 = arith.constant 0 : index
    %c0_10 = arith.constant 0 : index
    %6 = vector.load %arg6[%c0_8, %c0_9, %c0_10] : memref<2x8x16xf32, #tpu.memory_space<vmem>>, vector<2x8x16xf32>
    tpu.vector_store %arg6[%c0_8, %c0_9, %c0_10], %5 {strides = array<i32>} : memref<2x8x16xf32, #tpu.memory_space<vmem>>, vector<2x8x16xf32>,
    return
  }
  func.func @transform_0(%arg0: i32, %arg1: i32, %arg2: i32) -> (i32, i32, i32) {
    %c0_i32 = arith.constant 0 : i32
    %c0_i32_0 = arith.constant 0 : i32
    return %arg0, %arg2, %c0_i32 : i32, i32, i32
  }
  func.func @transform_1(%arg0: i32, %arg1: i32, %arg2: i32) -> (i32, i32, i32) {
    %c0_i32 = arith.constant 0 : i32
    %c0_i32_0 = arith.constant 0 : i32
    return %arg0, %arg1, %c0_i32 : i32, i32, i32
  }
  func.func @transform_2(%arg0: i32, %arg1: i32, %arg2: i32) -> (i32, i32, i32) {
    %c0_i32 = arith.constant 0 : i32
    %c0_i32_0 = arith.constant 0 : i32
    return %arg0, %c0_i32, %arg1 : i32, i32, i32
  }
  func.func @transform_3(%arg0: i32, %arg1: i32, %arg2: i32) -> (i32, i32, i32) {
    %c0_i32 = arith.constant 0 : i32
    return %arg0, %arg2, %arg1 : i32, i32, i32
  }
}

</mosaic_0001>

<bundles_post_ra>
// kernel: ensembled_linear.1
= control target key start
LH: loop header
LB: loop body
LE: loop exit
PB: predicated region body
PF: predicated region fallthrough
CT: control target
= control target key end

     0   :  { %s720_s12 = smov 0   ;;  %s722_s13 = smov 0   ;;  %s763_s0 = inlined_call_operand.vmem [shape: f32[4,8,32], index: 0, kind: input, shape index: {}]   ;;  %s764_s1 = inlined_call_operand.vmem [shape: f32[4,16,32], index: 1, kind: input, shape index: {}]   ;;  %s765_s2 = inlined_call_operand.vmem [shape: f32[4,1,16], index: 2, kind: input, shape index: {}]   ;;  %s766_s3 = inlined_call_operand.vmem [shape: f32[4,8,16], index: 3, kind: output, shape index: {}]  }
   0x1   :  { %s724_s14 = smov 0  }
   0x2 LB: > { %s32_s15 = sadd.s32 1, %s691_s13  ;;  %p598_p0 = scmp.ge.s32.totalorder %s695_s14, 1  ;;  %s695_s14 = sphi %s724_s14, %s13_s14   ;;  %s691_s13 = sphi %s722_s13, %s768_s13   ;;  %s687_s12 = sphi %s720_s12, %s767_s12  }
   0x3   : > { %p34_p1 = scmp.ge.s32.totalorder %s32_s15, 2  ;;  %p200_p2 = scmp.lt.s32.totalorder %s695_s14, 3 }
   0x5   : > { %s770_s15 = smov (%p34_p1, %s32_s15), 0  ;;  %p201_p3 = pnand %p598_p0, %p200_p2 }
   0x6   : > { %s599_s16 = sshll.u32 (!%p201_p3), %s687_s12, 1  ;;  %v697_v0 = vmov (!%p201_p3), 0.0|0.0   ;;  %vm698_vm0 = vmmov (!%p201_p3), 0   ;;  %v699_v1 = vmov (!%p201_p3), 0.0   ;;  %vm311_vm1 = vcmask (!%p201_p3), 261120  }
   0x7   : > { %204 = sbr.rel (%p201_p3) target bundleno = 243 (0xf3), region = 32  ;;  %638 = vmatprep.subr.bf16.mxu0 (!%p201_p3), %v697_v0  ;;  %642 = vmatprep.subr.bf16.mxu1 (!%p201_p3), %v697_v0  ;;  %p251_p4 = scmp.lt.s32.totalorder (!%p201_p3), %s599_s16, 3  ;;  %vm640_vm2 = vmpackc.low (!%p201_p3), %vm311_vm1, %vm311_vm1  ;;  %vm470_vm3 = vcmask (!%p201_p3), 130048  }
   0x8   : > { %628 = vmatprep.mubr.msk.f32.mxu0 (!%p201_p3), %vm698_vm0, %v699_v1  ;;  %635 = vmatprep.mubr.msk.f32.mxu1 (!%p201_p3), %vm698_vm0, %v699_v1 }
   0xe   : > { %s772_s16 = smov (!%p251_p4, %s599_s16), 3 }
   0xf   : > { %s617_s17 = sshll.u32 %s772_s16, 4  ;;  %s600_s21 = sshll.u32 %s772_s16, 3 }
  0x10   : > { %s268_s20 = scalar_lea.vmem %s764_s1, %s617_s17  ;;  %s257_s24 = scalar_lea.vmem %s763_s0, %s600_s21 }
  0x11   : > { %v293_v2 = vld [vmem:[%s268_s20] sm:$0xff]  ;;  %v294_v3 = vld [vmem:[%s268_s20 + $0x8] sm:$0xff]  ;;  %v295_v4 = vld [vmem:[%s268_s20 + $0x10] sm:$0xff]  ;;  %s277_s27 = scalar_lea.vmem %s765_s2, %s772_s16  ;;  %s289_s30 = scalar_lea.vmem %s766_s3, %s600_s21 }
  0x12   : > { %v639_v5 = vpack.c.bf16 %v294_v3, %v293_v2  ;;  %v296_v6 = vld [vmem:[%s268_s20 + $0x18] sm:$0xff]  ;;  %v291_v8 = vld [vmem:[%s257_s24] sm:$0xff]  ;;  %v292_v9 = vld [vmem:[%s257_s24 + $0x8] sm:$0xff] }
  0x13   : > { %v643_v7 = vpack.c.bf16 %v296_v6, %v295_v4  ;;  %v607_v10 = vld [vmem:[%s277_s27] ss:$0 sm:$0xff]  ;;  %v608_v11 = vld [vmem:[%s277_s27 + $0x1] ss:$0 sm:$0xff] }
  0x14   : > { %641 = vmatpush3.bf16.xpose.msk.msra.mxu0 %vm640_vm2, %v639_v5 }
  0x15   : > { %645 = vmatpush3.bf16.xpose.msk.msra.mxu1 %vm640_vm2, %v643_v7 }
  0x1b   : > { %629 = vmatmul.mubr.msk.f32.vlgmr.msra.gmra.mrb[0].mxu0 %vm311_vm1, %v291_v8 }
  0x1c   : > { %636 = vmatmul.mubr.msk.f32.vlgmr.msra.gmra.mrb[0].mxu1 %vm311_vm1, %v292_v9 }
  0xee   : > { %v387_v12 = vpop.f32.mrb[0].mxu0 }
  0xef   : > { %v388_v13 = vadd.f32 %v607_v10, %v387_v12  ;;  %v466_v14 = vpop.f32.mrb[0].mxu1  ;;  %v630_v15 = vpop.f32.mrb[1].mxu0 }
  0xf0   : > { %v467_v16 = vadd.f32 %v608_v11, %v466_v14  ;;  %v637_v17 = vpop.f32.mrb[1].mxu1 }
  0xf1   : > { %471 = vst.msk [vmem:[%s289_s30] sm:$0xff] %vm470_vm3, %v388_v13 }
  0xf2   : > { %472 = vst.msk [vmem:[%s289_s30 + $0x8] sm:$0xff] %vm470_vm3, %v467_v16 }
  0xf3 PF: > { %s13_s14 = sadd.s32 1, %s695_s14   ;;  %s767_s12 = smov %s691_s13 }
  0xf4   : > { %p10_p5 = scmp.ge.s32.totalorder %s13_s14, 4   ;;  %s768_s13 = smov %s770_s15 }
  0xf6   :  { %12 = sbr.rel (!%p10_p5) target bundleno = 2 (0x2), region = 68 }

</bundles_post_ra>
